<compile_context>
chip_gen: v5e
topology: v5e:2x2
jax: 0.10.0
libtpu: 0.0.40
codegen_flags: <defaults>
</compile_context>

<pallas_src>
import functools

import jax
import jax.numpy as jnp
from jax.experimental import pallas as pl
from jax.experimental.pallas import tpu as pltpu


def _codebook_sq_sum_kernel(q_ref, ehi_ref, elo_ref, idx_ref, out_ref, acc_ref, *,
                            block_q, c_pad, tiles_per_chunk, total_tiles,
                            rows_total, need_mask):
    """Accumulates sum((emb[idx] - q)^2) over one chunk of query rows.

    Grid = (num_chunks ["parallel"], tiles_per_chunk ["arbitrary" reduction]).
    """
    c = pl.program_id(0)
    i = pl.program_id(1)
    d = q_ref.shape[-1]

    # Zero the single-vreg accumulator on the first reduction step of each chunk.
    @pl.when(i == 0)
    def _():
        acc_ref[...] = jnp.zeros_like(acc_ref)

    q = q_ref[...].astype(jnp.float32)        # [block_q, D] (bf16 inputs upcast here)
    idx = idx_ref[...]                        # [block_q, 1] int32

    # Fused gather: one-hot(idx) @ codebook on the MXU.  Codebook is resident in
    # VMEM as a bf16 hi/lo split, so this is two single-pass bf16 matmuls with f32
    # accumulation (near-f32-exact for exact 0/1 one-hot rows).
    cls = jax.lax.broadcasted_iota(jnp.int32, (block_q, c_pad), 1)
    one_hot = (idx == cls).astype(jnp.bfloat16)            # [block_q, c_pad]
    selected = (jnp.dot(one_hot, ehi_ref[...], preferred_element_type=jnp.float32)
                + jnp.dot(one_hot, elo_ref[...], preferred_element_type=jnp.float32))

    diff = selected - q
    sq = diff * diff                                       # [block_q, D]

    def accumulate(vals):
        # [block_q, D] -> [8, D] with pure-VPU vreg tree adds, then a single 4 KiB
        # accumulator read-modify-write (no full-tile store traffic).
        acc_ref[...] += vals.reshape(block_q // 8, 8, d).sum(axis=0)

    if need_mask:
        # Only the globally-last tile is ragged; keep masking off the hot path.
        global_tile = c * tiles_per_chunk + i

        @pl.when(global_tile != total_tiles - 1)
        def _():
            accumulate(sq)

        @pl.when(global_tile == total_tiles - 1)
        def _():
            # Rows past the real array are out-of-bounds garbage; select (not
            # multiply) so inf/NaN in those rows is harmless.
            row = (jax.lax.broadcasted_iota(jnp.int32, sq.shape, 0)
                   + global_tile * block_q)
            accumulate(jnp.where(row < rows_total, sq, 0.0))
    else:
        accumulate(sq)

    # Single finalize per chunk: dump the (8, D) partial sums (lane-dense store).
    @pl.when(i == pl.num_programs(1) - 1)
    def _():
        out_ref[0] = acc_ref[...]


def codebook_loss(query_features, class_embeddings, class_indices,
                  commitment_cost=0.25, block_q=4096, num_chunks=1,
                  vmem_budget_bytes=12 * 1024 * 1024):
    """Scalar float32 loss matching CodebookLoss.forward (forward pass only)."""
    Q, D = query_features.shape
    C, D2 = class_embeddings.shape
    assert D == D2, "feature dims must match"

    # ---- codebook prep (tiny, O(C*D)) --------------------------------------
    # Pad the class axis to a multiple of 128 (lane width / MXU K quantum).
    c_pad = max(128, -(-C // 128) * 128)
    # If query rows need sublane padding we point their indices at a guaranteed
    # zero codebook row, so make sure one exists.
    row_pad = (-Q) % 8
    if row_pad and c_pad == C:
        c_pad += 128
    emb = class_embeddings.astype(jnp.float32)
    if c_pad != C:
        emb = jnp.pad(emb, ((0, c_pad - C), (0, 0)))
    # bf16 hi/lo split: hi + lo == emb to ~2^-18 relative; keeps the MXU in its
    # fast single-pass bf16 mode on every generation (esp. v5e).
    emb_hi = emb.astype(jnp.bfloat16)
    emb_lo = (emb - emb_hi.astype(jnp.float32)).astype(jnp.bfloat16)

    idx = class_indices.astype(jnp.int32)
    q = query_features
    if row_pad:
        # Rare ragged case: pad to a sublane multiple with rows that contribute 0.
        q = jnp.pad(q, ((0, row_pad), (0, 0)))
        idx = jnp.pad(idx, (0, row_pad), constant_values=C)
    rows_total = Q + row_pad
    idx2d = idx.reshape(rows_total, 1)

    # ---- tile-size selection with explicit VMEM accounting -----------------
    # Double-buffered per-row cost: q row (D * itemsize) + idx row, whose single
    # lane pads out to 128 lanes of int32 in VMEM (the hidden idx-buffer cost).
    q_bytes = q.dtype.itemsize
    per_row = 2 * (D * q_bytes + 128 * 4)
    resident = 2 * 2 * (c_pad * D * 2) + 2 * (8 * D * 4) + 8 * D * 4  # codebooks, out, acc
    budget_rows = max(8, (vmem_budget_bytes - resident) // per_row)
    block_q = min(block_q, int(budget_rows))
    if block_q >= rows_total:
        block_q = rows_total                     # single tile == full dim (always legal)
    else:
        block_q = max(8, (block_q // 8) * 8)     # sublane-aligned tiles
    total_tiles = pl.cdiv(rows_total, block_q)
    if num_chunks < 1 or total_tiles % num_chunks != 0:
        num_chunks = 1                           # fall back to one serial reduction
    tiles_per_chunk = total_tiles // num_chunks
    need_mask = (rows_total % block_q) != 0

    kernel = functools.partial(
        _codebook_sq_sum_kernel,
        block_q=block_q, c_pad=c_pad, tiles_per_chunk=tiles_per_chunk,
        total_tiles=total_tiles, rows_total=rows_total, need_mask=need_mask)

    partial_sums = pl.pallas_call(
        kernel,
        out_shape=jax.ShapeDtypeStruct((num_chunks, 8, D), jnp.float32),
        grid_spec=pltpu.PrefetchScalarGridSpec(
            num_scalar_prefetch=0,
            grid=(num_chunks, tiles_per_chunk),
            in_specs=[
                # streamed query tiles
                pl.BlockSpec((block_q, D), lambda c, i: (c * tiles_per_chunk + i, 0)),
                # codebook hi/lo: constant block index -> resident in VMEM
                pl.BlockSpec((c_pad, D), lambda c, i: (0, 0)),
                pl.BlockSpec((c_pad, D), lambda c, i: (0, 0)),
                # per-tile class indices
                pl.BlockSpec((block_q, 1), lambda c, i: (c * tiles_per_chunk + i, 0)),
            ],
            out_specs=pl.BlockSpec((1, 8, D), lambda c, i: (c, 0, 0)),
            scratch_shapes=[pltpu.VMEM((8, D), jnp.float32)],
        ),
        compiler_params=pltpu.CompilerParams(
            dimension_semantics=("parallel", "arbitrary")),
    )(q, emb_hi, emb_lo, idx2d)

    mse = jnp.sum(partial_sums) / jnp.float32(Q * D)
    # codebook_loss == commitment_loss == mse in the forward pass.
    return ((1.0 + commitment_cost) * mse).astype(jnp.float32)


if __name__ == "__main__":
    key = jax.random.PRNGKey(0)
    k_q, k_e, k_i = jax.random.split(key, 3)

    Q, D, num_classes = 64, 128, 16
    commitment_cost = 0.25

    query_features = jax.random.normal(k_q, (Q, D), dtype=jnp.float32)
    class_embeddings = jax.random.normal(k_e, (num_classes + 1, D), dtype=jnp.float32)
    class_indices = jax.random.randint(k_i, (Q,), 0, num_classes + 1, dtype=jnp.int32)

    loss = codebook_loss(query_features, class_embeddings, class_indices,
                         commitment_cost=commitment_cost)
    loss = jax.block_until_ready(loss)

    # Pure-JAX reference for correctness (forward semantics of CodebookLoss).
    sel = class_embeddings[class_indices]
    mse = jnp.mean((sel - query_features) ** 2)
    ref = mse + commitment_cost * mse
    assert jnp.allclose(loss, ref, rtol=1e-5, atol=1e-6), (loss, ref)

    print("KERNEL_OK")
</pallas_src>

<mosaic_0001>
module attributes {stable_mosaic.version = 11 : i64} {
  func.func @_codebook_sq_sum_kernel(%arg0: i32, %arg1: i32, %arg2: memref<64x128xf32, #tpu.memory_space<vmem>>, %arg3: memref<128x128xbf16, #tpu.memory_space<vmem>>, %arg4: memref<128x128xbf16, #tpu.memory_space<vmem>>, %arg5: memref<64x1xi32, #tpu.memory_space<vmem>>, %arg6: memref<1x8x128xf32, #tpu.memory_space<vmem>>, %arg7: memref<8x128xf32, #tpu.memory_space<vmem>>) attributes {dimension_semantics = [#tpu.dimension_semantics<parallel>, #tpu.dimension_semantics<arbitrary>], iteration_bounds = array<i64: 1, 1>, scalar_prefetch = 0 : i64, scratch_operands = 1 : i64, tpu.core_type = #tpu.core_type<tc>, window_params = [{transform_indices = @transform_0, window_bounds = array<i64: 64, 128>}, {pipeline_mode = #tpu.pipeline_mode<synchronous>, transform_indices = @transform_1, window_bounds = array<i64: 128, 128>}, {pipeline_mode = #tpu.pipeline_mode<synchronous>, transform_indices = @transform_2, window_bounds = array<i64: 128, 128>}, {transform_indices = @transform_3, window_bounds = array<i64: 64, 1>}, {transform_indices = @transform_4, window_bounds = array<i64: 1, 8, 128>}]} {
    %c0_i32 = arith.constant 0 : i32
    %0 = arith.cmpi eq, %arg1, %c0_i32 : i32
    %1 = arith.extui %0 : i1 to i32
    %c0_i32_0 = arith.constant 0 : i32
    %2 = arith.cmpi ne, %1, %c0_i32_0 : i32
    scf.if %2 {
      %cst_16 = arith.constant 0.000000e+00 : f32
      %26 = vector.broadcast %cst_16 : f32 to vector<8x128xf32>
      %c0_17 = arith.constant 0 : index
      %c0_18 = arith.constant 0 : index
      %27 = vector.load %arg7[%c0_17, %c0_18] : memref<8x128xf32, #tpu.memory_space<vmem>>, vector<8x128xf32>
      tpu.vector_store %arg7[%c0_17, %c0_18], %26 {strides = array<i32>} : memref<8x128xf32, #tpu.memory_space<vmem>>, vector<8x128xf32>,
    } else {
    }
    %c0 = arith.constant 0 : index
    %c0_1 = arith.constant 0 : index
    %3 = vector.load %arg2[%c0, %c0_1] : memref<64x128xf32, #tpu.memory_space<vmem>>, vector<64x128xf32>
    %c0_2 = arith.constant 0 : index
    %c0_3 = arith.constant 0 : index
    %4 = vector.load %arg5[%c0_2, %c0_3] : memref<64x1xi32, #tpu.memory_space<vmem>>, vector<64x1xi32>
    %5 = tpu.iota {dimensions = array<i32: 1>} : vector<64x128xi32>
    %6 = vector.broadcast %4 : vector<64x1xi32> to vector<64x128xi32>
    %7 = arith.cmpi eq, %6, %5 : vector<64x128xi32>
    %8 = arith.extui %7 : vector<64x128xi1> to vector<64x128xi32>
    %9 = arith.sitofp %8 : vector<64x128xi32> to vector<64x128xf32>
    %10 = arith.truncf %9 : vector<64x128xf32> to vector<64x128xbf16>
    %c0_4 = arith.constant 0 : index
    %c0_5 = arith.constant 0 : index
    %11 = vector.load %arg3[%c0_4, %c0_5] : memref<128x128xbf16, #tpu.memory_space<vmem>>, vector<128x128xbf16>
    %cst = arith.constant dense<0.000000e+00> : vector<64x128xf32>
    %12 = tpu.matmul %10, %11, %cst {dimension_numbers = #tpu.dot_dimension_numbers<[1], [0], [0], [1], [0, 0, 1, 1], [], []>} : vector<64x128xbf16>, vector<128x128xbf16>, vector<64x128xf32> -> vector<64x128xf32>
    %c0_6 = arith.constant 0 : index
    %c0_7 = arith.constant 0 : index
    %13 = vector.load %arg4[%c0_6, %c0_7] : memref<128x128xbf16, #tpu.memory_space<vmem>>, vector<128x128xbf16>
    %cst_8 = arith.constant dense<0.000000e+00> : vector<64x128xf32>
    %14 = tpu.matmul %10, %13, %cst_8 {dimension_numbers = #tpu.dot_dimension_numbers<[1], [0], [0], [1], [0, 0, 1, 1], [], []>} : vector<64x128xbf16>, vector<128x128xbf16>, vector<64x128xf32> -> vector<64x128xf32>
    %15 = arith.addf %12, %14 : vector<64x128xf32>
    %16 = arith.subf %15, %3 : vector<64x128xf32>
    %17 = arith.mulf %16, %16 : vector<64x128xf32>
    %c0_9 = arith.constant 0 : index
    %c0_10 = arith.constant 0 : index
    %18 = vector.load %arg7[%c0_9, %c0_10] : memref<8x128xf32, #tpu.memory_space<vmem>>, vector<8x128xf32>
    %19 = vector.shape_cast %17 : vector<64x128xf32> to vector<8x8x128xf32>
    %cst_11 = arith.constant dense<0.000000e+00> : vector<8x128xf32>
    %20 = vector.multi_reduction <add>, %19, %cst_11 [0] : vector<8x8x128xf32> to vector<8x128xf32>
    %21 = arith.addf %18, %20 : vector<8x128xf32>
    %c0_12 = arith.constant 0 : index
    %c0_13 = arith.constant 0 : index
    %22 = vector.load %arg7[%c0_12, %c0_13] : memref<8x128xf32, #tpu.memory_space<vmem>>, vector<8x128xf32>
    tpu.vector_store %arg7[%c0_12, %c0_13], %21 {strides = array<i32>} : memref<8x128xf32, #tpu.memory_space<vmem>>, vector<8x128xf32>,
    %c0_i32_14 = arith.constant 0 : i32
    %23 = arith.cmpi eq, %arg1, %c0_i32_14 : i32
    %24 = arith.extui %23 : i1 to i32
    %c0_i32_15 = arith.constant 0 : i32
    %25 = arith.cmpi ne, %24, %c0_i32_15 : i32
    scf.if %25 {
      %c0_16 = arith.constant 0 : index
      %c0_17 = arith.constant 0 : index
      %26 = vector.load %arg7[%c0_16, %c0_17] : memref<8x128xf32, #tpu.memory_space<vmem>>, vector<8x128xf32>
      %c0_18 = arith.constant 0 : index
      %c0_19 = arith.constant 0 : index
      %c0_20 = arith.constant 0 : index
      %27 = vector.load %arg6[%c0_18, %c0_19, %c0_20] : memref<1x8x128xf32, #tpu.memory_space<vmem>>, vector<1x8x128xf32>
      %28 = vector.shape_cast %27 : vector<1x8x128xf32> to vector<8x128xf32>
      %29 = vector.shape_cast %26 : vector<8x128xf32> to vector<1x8x128xf32>
      tpu.vector_store %arg6[%c0_18, %c0_19, %c0_20], %29 {strides = array<i32>} : memref<1x8x128xf32, #tpu.memory_space<vmem>>, vector<1x8x128xf32>,
    } else {
    }
    return
  }
  func.func @transform_0(%arg0: i32, %arg1: i32) -> (i32, i32) {
    %c1_i32 = arith.constant 1 : i32
    %0 = arith.muli %arg0, %c1_i32 : i32
    %1 = arith.addi %0, %arg1 : i32
    %c0_i32 = arith.constant 0 : i32
    %c0_i32_0 = arith.constant 0 : i32
    return %1, %c0_i32 : i32, i32
  }
  func.func @transform_1(%arg0: i32, %arg1: i32) -> (i32, i32) {
    %c0_i32 = arith.constant 0 : i32
    %c0_i32_0 = arith.constant 0 : i32
    %c0_i32_1 = arith.constant 0 : i32
    return %c0_i32, %c0_i32_0 : i32, i32
  }
  func.func @transform_2(%arg0: i32, %arg1: i32) -> (i32, i32) {
    %c0_i32 = arith.constant 0 : i32
    %c0_i32_0 = arith.constant 0 : i32
    %c0_i32_1 = arith.constant 0 : i32
    return %c0_i32, %c0_i32_0 : i32, i32
  }
  func.func @transform_3(%arg0: i32, %arg1: i32) -> (i32, i32) {
    %c1_i32 = arith.constant 1 : i32
    %0 = arith.muli %arg0, %c1_i32 : i32
    %1 = arith.addi %0, %arg1 : i32
    %c0_i32 = arith.constant 0 : i32
    %c0_i32_0 = arith.constant 0 : i32
    return %1, %c0_i32 : i32, i32
  }
  func.func @transform_4(%arg0: i32, %arg1: i32) -> (i32, i32, i32) {
    %c0_i32 = arith.constant 0 : i32
    %c0_i32_0 = arith.constant 0 : i32
    %c0_i32_1 = arith.constant 0 : i32
    return %arg0, %c0_i32, %c0_i32_0 : i32, i32, i32
  }
}

</mosaic_0001>

<bundles_post_ra>
// kernel: tpu_custom_call.1
= control target key start
LH: loop header
LB: loop body
LE: loop exit
PB: predicated region body
PF: predicated region fallthrough
CT: control target
= control target key end

     0   :  { %9 = vsyncpa [#allocation4], 0  ;;  %s713_s0 = inlined_call_operand.vmem [shape: f32[64,128], index: 0, kind: input, shape index: {}]   ;;  %s714_s1 = inlined_call_operand.hbm [shape: bf16[128,128], index: 1, kind: input, shape index: {}]   ;;  %s715_s2 = inlined_call_operand.hbm [shape: bf16[128,128], index: 2, kind: input, shape index: {}]   ;;  %s716_s3 = inlined_call_operand.vmem [shape: s32[64,1], index: 3, kind: input, shape index: {}]   ;;  %s717_s4 = inlined_call_operand.hbm [shape: f32[1,8,128], index: 4, kind: output, shape index: {}]  }
   0x1   :  { %10 = vsyncpa [#allocation7], 0 }
   0x2   :  { %11 = vsyncpa [#allocation5], 0  ;;  %s26_s17 = sshll.u32 %s714_s1, 4  ;;  %s624_s18 = smov [#allocation3]   ;;  %s27_s17 = int_to_ptr.hbm [resolvable:$true] %s26_s17 }
   0x3   :  { %s28_s19 = sshll.u32 %s624_s18, 4  ;;  %s39_s22 = sshll.u32 %s715_s2, 4  ;;  %s29_s19 = int_to_ptr.vmem [resolvable:$true] %s28_s19  ;;  %s40_s22 = int_to_ptr.hbm [resolvable:$true] %s39_s22 }
   0x4   :  { %s625_s23 = smov 64   ;;  %s626_s24 = smov 4  }
   0x5   :  { %34 = dma.hbm_to_vmem [thread:$0]  %s27_s17, 1024, %s29_s19, [#allocation4], %s625_s23, %s625_s23, %s626_s24  }
   0x6   :  { %s627_s25 = smov [#allocation6]  }
   0x7   :  { %s41_s26 = sshll.u32 %s627_s25, 4  ;;  %s42_s26 = int_to_ptr.vmem [resolvable:$true] %s41_s26 }
   0x8   :  { %47 = dma.hbm_to_vmem [thread:$0]  %s40_s22, 1024, %s42_s26, [#allocation7], %s625_s23, %s625_s23, %s626_s24  }
   0x9   :  { %618 = dma.done.wait [#allocation4], 1024  }
   0xa   :  { %619 = vsyncadd [#allocation4], 4294966272 }
   0xb   :  { %620 = dma.done.wait [#allocation7], 1024  }
   0xc   :  { %621 = vsyncadd [#allocation7], 4294966272  ;;  %v628_v0 = vmov 0   ;;  %v111_v1 = vld [vmem:[%s716_s3 + $0x20] sm:$0xff]  ;;  %v109_v3 = vld [vmem:[%s716_s3 + $0x10] sm:$0xff]  ;;  %v115_v27 = vlaneseq  ;;  %s630_s28 = smov [#allocation8]  }
   0xd   :  { %544 = vset.pattern.permute.xlu1 %v628_v0  ;;  %543 = vset.pattern.permute.xlu0 %v628_v0  ;;  %v107_v2 = vld [vmem:[%s716_s3] sm:$0xff]  ;;  %v519_v4 = vld [vmem:[#allocation6 + $0x38] sm:$0xff]  ;;  %v518_v6 = vld [vmem:[#allocation6 + $0x30] sm:$0xff]  ;;  %v629_v32 = vmov 1.0|1.0   ;;  %s391_s29 = sshll.u32 %s630_s28, 4  ;;  %s392_s29 = int_to_ptr.vmem [resolvable:$true] %s391_s29 }
   0xe   :  { %545 = vset.pattern.permute.xlu2 %v628_v0  ;;  %130 = vperm.xlu1 %544, %v111_v1   ;;  %v511_v5 = vld [vmem:[#allocation3 + $0x38] sm:$0xff]  ;;  %v112_v7 = vld [vmem:[%s716_s3 + $0x28] sm:$0xff]  ;;  %v510_v9 = vld [vmem:[#allocation3 + $0x30] sm:$0xff]  ;;  %v116_v28 = vand.u32 127, %v115_v27  ;;  %s393_s6 = sshll.u32 %s717_s4, 4  ;;  %s394_s6 = int_to_ptr.hbm [resolvable:$true] %s393_s6 }
   0xf   :  { %118 = vperm.xlu0 %543, %v107_v2   ;;  %124 = vperm.xlu2 %545, %v109_v3   ;;  %v108_v8 = vld [vmem:[%s716_s3 + $0x8] sm:$0xff]  ;;  %v110_v10 = vld [vmem:[%s716_s3 + $0x18] sm:$0xff]  ;;  %v516_v13 = vld [vmem:[#allocation6 + $0x20] sm:$0xff] }
  0x10   :  { %249 = vmatpush.bf16.msra.mxu0 %v519_v4  ;;  %520 = vmatpush.bf16.msra.mxu2 %v519_v4  ;;  %v517_v11 = vld [vmem:[#allocation6 + $0x28] sm:$0xff]  ;;  %v114_v14 = vld [vmem:[%s716_s3 + $0x38] sm:$0xff]  ;;  %v113_v15 = vld [vmem:[%s716_s3 + $0x30] sm:$0xff] }
  0x11   :  { %326 = vmatpush.bf16.msra.mxu1 %v511_v5  ;;  %528 = vmatpush.bf16.msra.mxu3 %v511_v5  ;;  %v509_v12 = vld [vmem:[#allocation3 + $0x28] sm:$0xff]  ;;  %v508_v16 = vld [vmem:[#allocation3 + $0x20] sm:$0xff]  ;;  %v515_v17 = vld [vmem:[#allocation6 + $0x18] sm:$0xff] }
  0x12   :  { %v507_v18 = vld [vmem:[#allocation3 + $0x18] sm:$0xff]  ;;  %v514_v19 = vld [vmem:[#allocation6 + $0x10] sm:$0xff]  ;;  %v513_v21 = vld [vmem:[#allocation6 + $0x8] sm:$0xff] }
  0x13   :  { %v506_v20 = vld [vmem:[#allocation3 + $0x10] sm:$0xff]  ;;  %v505_v22 = vld [vmem:[#allocation3 + $0x8] sm:$0xff]  ;;  %v512_v23 = vld [vmem:[#allocation6] sm:$0xff] }
  0x14   :  { %250 = vmatpush.bf16.msra.mxu0 %v518_v6  ;;  %521 = vmatpush.bf16.msra.mxu2 %v518_v6  ;;  %v504_v24 = vld [vmem:[#allocation3] sm:$0xff]  ;;  %v100_v45 = vld [vmem:[%s713_s0 + $0x8] sm:$0xff]  ;;  %v101_v51 = vld [vmem:[%s713_s0 + $0x10] sm:$0xff] }
  0x15   :  { %327 = vmatpush.bf16.msra.mxu1 %v510_v9  ;;  %529 = vmatpush.bf16.msra.mxu3 %v510_v9  ;;  %v99_v50 = vld [vmem:[%s713_s0] sm:$0xff]  ;;  %v102_v61 = vld [vmem:[%s713_s0 + $0x18] sm:$0xff]  ;;  %v104_v3 = vld [vmem:[%s713_s0 + $0x28] sm:$0xff] }
  0x16   :  { %133 = vperm.xlu1 %544, %v112_v7   ;;  %v103_v59 = vld [vmem:[%s713_s0 + $0x20] sm:$0xff] }
  0x17   :  { %121 = vperm.xlu0 %543, %v108_v8   ;;  %127 = vperm.xlu2 %545, %v110_v10   ;;  %v105_v8 = vld [vmem:[%s713_s0 + $0x30] sm:$0xff] }
  0x18   :  { %251 = vmatpush.bf16.msra.mxu0 %v517_v11  ;;  %522 = vmatpush.bf16.msra.mxu2 %v517_v11 }
  0x19   :  { %328 = vmatpush.bf16.msra.mxu1 %v509_v12  ;;  %530 = vmatpush.bf16.msra.mxu3 %v509_v12 }
  0x1c   :  { %252 = vmatpush.bf16.msra.mxu0 %v516_v13  ;;  %523 = vmatpush.bf16.msra.mxu2 %v516_v13 }
  0x1d   :  { %329 = vmatpush.bf16.msra.mxu1 %v508_v16  ;;  %531 = vmatpush.bf16.msra.mxu3 %v508_v16 }
  0x1e   :  { %139 = vperm.xlu1 %544, %v114_v14   ;;  %v106_v14 = vld [vmem:[%s713_s0 + $0x38] sm:$0xff] }
  0x1f   :  { %136 = vperm.xlu0 %543, %v113_v15  }
  0x20   :  { %253 = vmatpush.bf16.msra.mxu0 %v515_v17  ;;  %524 = vmatpush.bf16.msra.mxu2 %v515_v17 }
  0x21   :  { %330 = vmatpush.bf16.msra.mxu1 %v507_v18  ;;  %532 = vmatpush.bf16.msra.mxu3 %v507_v18 }
  0x24   :  { %254 = vmatpush.bf16.msra.mxu0 %v514_v19  ;;  %525 = vmatpush.bf16.msra.mxu2 %v514_v19 }
  0x25   :  { %331 = vmatpush.bf16.msra.mxu1 %v506_v20  ;;  %533 = vmatpush.bf16.msra.mxu3 %v506_v20 }
  0x28   :  { %255 = vmatpush.bf16.msra.mxu0 %v513_v21  ;;  %526 = vmatpush.bf16.msra.mxu2 %v513_v21 }
  0x29   :  { %332 = vmatpush.bf16.msra.mxu1 %v505_v22  ;;  %534 = vmatpush.bf16.msra.mxu3 %v505_v22 }
  0x2c   :  { %256 = vmatpush.bf16.msra.mxu0 %v512_v23  ;;  %527 = vmatpush.bf16.msra.mxu2 %v512_v23 }
  0x2d   :  { %333 = vmatpush.bf16.msra.mxu1 %v504_v24  ;;  %535 = vmatpush.bf16.msra.mxu3 %v504_v24 }
  0x69   :  { %v125_v31 = vpop.permute.xlu2 %124 }
  0x6a   :  { %vm143_vm8 = vcmp.eq.s32.totalorder %v125_v31, %v116_v28 }
  0x71   :  { %v128_v35 = vpop.permute.xlu2 %127 }
  0x72   :  { %vm144_vm9 = vcmp.eq.s32.totalorder %v128_v35, %v116_v28 }
  0x73   :  { %vm458_vm11 = vmpackc.low %vm144_vm9, %vm143_vm8 }
  0x80   :  { %v131_v25 = vpop.permute.xlu1 %130 }
  0x81   :  { %v119_v26 = vpop.permute.xlu0 %118  ;;  %vm145_vm0 = vcmp.eq.s32.totalorder %v131_v25, %v116_v28 }
  0x82   :  { %vm141_vm3 = vcmp.eq.s32.totalorder %v119_v26, %v116_v28 }
  0x88   :  { %v134_v29 = vpop.permute.xlu1 %133 }
  0x89   :  { %v122_v30 = vpop.permute.xlu0 %121  ;;  %vm146_vm1 = vcmp.eq.s32.totalorder %v134_v29, %v116_v28 }
  0x8a   :  { %vm142_vm2 = vcmp.eq.s32.totalorder %v122_v30, %v116_v28  ;;  %vm460_vm4 = vmpackc.low %vm146_vm1, %vm145_vm0 }
  0x8b   :  { %vm456_vm5 = vmpackc.low %vm142_vm2, %vm141_vm3  ;;  %461 = vmatmul.msk.bf16.vlgmr.msra.gmra.mxu2 %vm460_vm4, %v629_v32  ;;  %501 = vmatmul.msk.bf16.vlgmr.msra.gmra.mxu3 %vm460_vm4, %v629_v32 }
  0x8c   :  { %457 = vmatmul.msk.bf16.vlgmr.msra.gmra.mxu0 %vm456_vm5, %v629_v32  ;;  %497 = vmatmul.msk.bf16.vlgmr.msra.gmra.mxu1 %vm456_vm5, %v629_v32 }
  0x90   :  { %v140_v33 = vpop.permute.xlu1 %139 }
  0x91   :  { %v137_v34 = vpop.permute.xlu0 %136  ;;  %vm148_vm6 = vcmp.eq.s32.totalorder %v140_v33, %v116_v28 }
  0x92   :  { %vm147_vm7 = vcmp.eq.s32.totalorder %v137_v34, %v116_v28 }
  0x93   :  { %vm462_vm10 = vmpackc.low %vm148_vm6, %vm147_vm7 }
  0x9b   :  { %463 = vmatmul.msk.bf16.gmra.mxu2 %vm462_vm10, %v629_v32  ;;  %503 = vmatmul.msk.bf16.gmra.mxu3 %vm462_vm10, %v629_v32 }
  0x9c   :  { %459 = vmatmul.msk.bf16.gmra.mxu0 %vm458_vm11, %v629_v32  ;;  %499 = vmatmul.msk.bf16.gmra.mxu1 %vm458_vm11, %v629_v32 }
 0x109   :  { %v258_v36 = vpop.f32.mrf.mxu0  ;;  %v335_v37 = vpop.f32.mrf.mxu1 }
 0x10a   :  { %v336_v48 = vadd.f32 %v335_v37, %v258_v36 }
 0x10c   :  { %v355_v53 = vsub.f32 %v336_v48, %v99_v50 }
 0x10e   :  { %v268_v38 = vpop.f32.mrf.mxu2  ;;  %v345_v39 = vpop.f32.mrf.mxu3  ;;  %v363_v63 = vmul.f32 %v355_v53, %v355_v53 }
 0x10f   :  { %v346_v57 = vadd.f32 %v345_v39, %v268_v38 }
 0x111   :  { %v260_v40 = vpop.f32.mrf.mxu0  ;;  %v337_v41 = vpop.f32.mrf.mxu1  ;;  %v359_v4 = vsub.f32 %v346_v57, %v103_v59 }
 0x112   :  { %v338_v44 = vadd.f32 %v337_v41, %v260_v40 }
 0x113   :  { %v367_v16 = vmul.f32 %v359_v4, %v359_v4 }
 0x114   :  { %v356_v52 = vsub.f32 %v338_v44, %v100_v45 }
 0x116   :  { %v270_v42 = vpop.f32.mrf.mxu2  ;;  %v347_v43 = vpop.f32.mrf.mxu3  ;;  %v364_v58 = vmul.f32 %v356_v52, %v356_v52 }
 0x117   :  { %v348_v0 = vadd.f32 %v347_v43, %v270_v42 }
 0x118   :  { %v372_v5 = vadd.f32 %v364_v58, %v363_v63 }
 0x119   :  { %v263_v46 = vpop.f32.mrf.mxu0  ;;  %v340_v47 = vpop.f32.mrf.mxu1  ;;  %v360_v9 = vsub.f32 %v348_v0, %v104_v3 }
 0x11a   :  { %v341_v49 = vadd.f32 %v340_v47, %v263_v46 }
 0x11b   :  { %v368_v19 = vmul.f32 %v360_v9, %v360_v9 }
 0x11c   :  { %v357_v54 = vsub.f32 %v341_v49, %v101_v51 }
 0x11e   :  { %v273_v55 = vpop.f32.mrf.mxu2  ;;  %v350_v56 = vpop.f32.mrf.mxu3  ;;  %v365_v1 = vmul.f32 %v357_v54, %v357_v54 }
 0x11f   :  { %v351_v6 = vadd.f32 %v350_v56, %v273_v55 }
 0x120   :  { %v373_v10 = vadd.f32 %v372_v5, %v365_v1 }
 0x121   :  { %v265_v60 = vpop.f32.mrf.mxu0  ;;  %v342_v62 = vpop.f32.mrf.mxu1  ;;  %v361_v17 = vsub.f32 %v351_v6, %v105_v8 }
 0x122   :  { %v343_v2 = vadd.f32 %v342_v62, %v265_v60 }
 0x123   :  { %v369_v22 = vmul.f32 %v361_v17, %v361_v17 }
 0x124   :  { %v358_v7 = vsub.f32 %v343_v2, %v102_v61 }
 0x126   :  { %v366_v11 = vmul.f32 %v358_v7, %v358_v7  ;;  %v275_v12 = vpop.f32.mrf.mxu2  ;;  %v352_v13 = vpop.f32.mrf.mxu3 }
 0x127   :  { %v353_v15 = vadd.f32 %v352_v13, %v275_v12 }
 0x128   :  { %v374_v18 = vadd.f32 %v373_v10, %v366_v11 }
 0x129   :  { %v362_v21 = vsub.f32 %v353_v15, %v106_v14 }
 0x12a   :  { %v375_v20 = vadd.f32 %v374_v18, %v367_v16 }
 0x12b   :  { %v370_v24 = vmul.f32 %v362_v21, %v362_v21 }
 0x12c   :  { %v376_v23 = vadd.f32 %v375_v20, %v368_v19 }
 0x12e   :  { %v377_v25 = vadd.f32 %v376_v23, %v369_v22 }
 0x130   :  { %v378_v26 = vadd.f32 %v377_v25, %v370_v24 }
 0x132   :  { %385 = vst [vmem:[#allocation8] sm:$0xff] %v378_v26 }
 0x133   :  { %396 = dma.vmem_to_hbm [thread:$0]  %s392_s29, 128, %s394_s6, [#allocation5]  }
 0x134   :  { %622 = dma.done.wait [#allocation5], 128  }
 0x135   :  { %623 = vsyncadd [#allocation5], 4294967168 }
 0x136   :  { %401 = vsyncpa [#allocation4], 1 }
 0x137   :  { %402 = vsyncpa [#allocation7], 1 }
 0x138   :  { %403 = vsyncpa [#allocation5], 1 }

</bundles_post_ra>
